<compile_context>
chip_gen: v6e
topology: v6e:2x2x1
jax: 0.10.0
libtpu: 0.0.40
codegen_flags: <defaults>
</compile_context>

<pallas_src>
import functools

import jax
import jax.numpy as jnp
from jax.experimental import pallas as pl
from jax.experimental.pallas import tpu as pltpu

LANE = 128            # hidden / output feature dims padded to lane multiples
SUBLANE = 8
MAX_BATCH_TILE = 2048 # large tiles amortize per-grid-step overhead (v5e/v6e)
VMEM_TILE_BUDGET = 16 * 1024 * 1024   # for the double-buffered x / out tiles


def _round_up(n, m):
    return ((n + m - 1) // m) * m


# ----------------------------------------------------------------------------
# Kernel: one batch tile of the fused L-linear MLP chain.
#   x_ref      : (TB, in_dim)       native dtype (f32) -> cast in-kernel
#   w0_ref     : (in_dim, PAD)      bf16, out dim zero-padded     (resident)
#   wstack_ref : (L-1, PAD, PAD)    bf16, zero-padded, stacked    (resident)
#   out_ref    : (TB, PAD)          bf16, lane-dense store
# ReLU follows every Linear except the last (dense_out), matching tabMLP.
# ----------------------------------------------------------------------------
def tab_mlp_kernel(x_ref, w0_ref, wstack_ref, out_ref):
    cdt = w0_ref.dtype
    x = x_ref[...].astype(cdt)                         # in-kernel cast (VPU)
    h = jnp.dot(x, w0_ref[...], preferred_element_type=jnp.float32)
    n_rest = wstack_ref.shape[0]                       # static

    def layer(i, h):
        h = jnp.maximum(h, 0.0)                        # ReLU after non-final Linear
        return jnp.dot(h.astype(cdt), wstack_ref[i],
                       preferred_element_type=jnp.float32)

    if n_rest <= 4:                                    # shallow: unroll
        for i in range(n_rest):
            h = layer(i, h)
    else:                                              # deep: bound live ranges
        h = jax.lax.fori_loop(0, n_rest, layer, h)

    out_ref[...] = h.astype(out_ref.dtype)             # no ReLU after dense_out


# ----------------------------------------------------------------------------
# One-time parameter preparation (hoisted out of the forward hot path).
#   weights: list of PyTorch-layout (out_dim, in_dim) matrices, forward order.
# Returns:
#   w0     : (in_dim, PAD)      transposed, out-dim zero-padded, bf16
#   wstack : (L-1, PAD, PAD)    transposed, zero-padded, stacked, bf16
# ----------------------------------------------------------------------------
def prepare_params(weights, compute_dtype=jnp.bfloat16):
    assert len(weights) >= 2, "tabMLP needs n_layers >= 2"
    wts = [jnp.transpose(w).astype(compute_dtype) for w in weights]   # (in, out)
    in_dim = wts[0].shape[0]
    # Zero-pad every hidden/output dim to one common lane-multiple width.
    # Correctness of padding relies on bias-free Linears + ReLU(0)=0.
    # TODO(synk): on v6e/v7x a 256-wide pad would use the full MXU when
    # layer_size > 128; irrelevant (HBM-bound) at tabMLP's default sizes.
    pad = _round_up(max([wts[0].shape[1]] + [max(w.shape) for w in wts[1:]]), LANE)

    w0 = jnp.zeros((in_dim, pad), compute_dtype)
    w0 = w0.at[:, : wts[0].shape[1]].set(wts[0])
    stack = []
    for w in wts[1:]:
        wp = jnp.zeros((pad, pad), compute_dtype)
        wp = wp.at[: w.shape[0], : w.shape[1]].set(w)
        stack.append(wp)
    wstack = jnp.stack(stack, axis=0)
    return w0, wstack


def _pick_batch_tile(batch, in_dim, pad, x_itemsize, out_itemsize):
    """Batch tile: big enough to amortize per-step overhead, gated on VMEM
    (safe on v7x's 64 MiB), and splitting into >=2 tiles past 64 rows so both
    v7x TensorCores run under dimension_semantics=("parallel",)."""
    per_row = 2 * in_dim * x_itemsize + 2 * pad * out_itemsize   # double buffers
    tb_cap = min(MAX_BATCH_TILE,
                 max(SUBLANE, (VMEM_TILE_BUDGET // per_row) // SUBLANE * SUBLANE))
    n_tiles = pl.cdiv(batch, tb_cap)
    if n_tiles == 1:
        if batch <= 64:
            return batch                 # one tile == full array dim (always legal)
        n_tiles = 2                      # give v7x's 2nd TensorCore some work
    return min(tb_cap, _round_up(pl.cdiv(batch, n_tiles), SUBLANE))


# ----------------------------------------------------------------------------
# Forward: x -> view(B, -1) -> fused Linear/ReLU chain -> (B, n_classes) f32
# ----------------------------------------------------------------------------
@functools.partial(jax.jit, static_argnames=("n_classes",))
def tab_mlp_forward(x, w0, wstack, *, n_classes):
    batch = x.shape[0]
    in_dim, pad = w0.shape
    n_rest = wstack.shape[0]
    x2d = x.reshape(batch, -1)                 # x.view(x.size(0), -1), no cast here
    assert x2d.shape[1] == in_dim

    out_dtype = jnp.bfloat16
    out_isz = jnp.dtype(out_dtype).itemsize
    tb = _pick_batch_tile(batch, in_dim, pad, x2d.dtype.itemsize, out_isz)
    grid = (pl.cdiv(batch, tb),)               # ragged last tile, no jnp.pad copy

    flops = 2 * batch * (in_dim * pad + n_rest * pad * pad)
    bytes_accessed = (x2d.size * x2d.dtype.itemsize
                      + w0.size * w0.dtype.itemsize
                      + wstack.size * wstack.dtype.itemsize
                      + batch * pad * out_isz)

    out = pl.pallas_call(
        tab_mlp_kernel,
        out_shape=jax.ShapeDtypeStruct((batch, pad), out_dtype),
        grid_spec=pltpu.PrefetchScalarGridSpec(
            num_scalar_prefetch=0,
            grid=grid,
            in_specs=[
                pl.BlockSpec((tb, in_dim), lambda i: (i, 0)),
                pl.BlockSpec((in_dim, pad), lambda i: (0, 0)),           # resident
                pl.BlockSpec((n_rest, pad, pad), lambda i: (0, 0, 0)),   # resident
            ],
            out_specs=pl.BlockSpec((tb, pad), lambda i: (i, 0)),
        ),
        compiler_params=pltpu.CompilerParams(
            dimension_semantics=("parallel",),     # shard batch grid over TCs (v7x)
            vmem_limit_bytes=32 * 1024 * 1024,     # tile budget keeps us well under
        ),
        cost_estimate=pl.CostEstimate(
            flops=flops, transcendentals=0, bytes_accessed=int(bytes_accessed)),
    )(x2d, w0, wstack)

    # Tiny epilogue: drop padded lanes, present f32 like the PyTorch module.
    return out[:, :n_classes].astype(jnp.float32)


# ----------------------------------------------------------------------------
# Deterministic parameter init (mimics nn.Linear's U(-1/sqrt(fan_in), ...),
# bias=False).  Shapes are PyTorch-style (out_dim, in_dim) in forward order.
# ----------------------------------------------------------------------------
def init_tab_mlp_params(key, in_channels, n_classes, layer_size, n_layers):
    shapes = [(layer_size, in_channels)]              # dense0
    for _ in range(1, n_layers - 1):
        shapes.append((layer_size, layer_size))       # dense{i}
    shapes.append((n_classes, layer_size))            # dense_out
    weights = []
    for shp in shapes:
        key, sub = jax.random.split(key)
        bound = 1.0 / (shp[1] ** 0.5)
        weights.append(jax.random.uniform(sub, shp, jnp.float32,
                                          minval=-bound, maxval=bound))
    return weights


def tab_mlp_reference(x, weights, compute_dtype=jnp.float32,
                      out_dtype=jnp.float32):
    """Pure-JAX mirror of the PyTorch forward.  With compute_dtype=bfloat16 and
    out_dtype=bfloat16 it mirrors the kernel's exact cast chain
    (bf16 operands, f32 accumulation, bf16 stored output)."""
    h = x.reshape(x.shape[0], -1)
    n = len(weights)
    for i, w in enumerate(weights):
        h = jnp.dot(h.astype(compute_dtype),
                    jnp.transpose(w).astype(compute_dtype),
                    preferred_element_type=jnp.float32)
        if i < n - 1:
            h = jnp.maximum(h, 0.0)
    return h.astype(out_dtype).astype(jnp.float32)


if __name__ == "__main__":
    IN_CHANNELS = 32
    N_CLASSES = 8
    LAYER_SIZE = 32     # tabMLP default
    N_LAYERS = 3        # tabMLP default
    BATCH = 8
    # TODO(synk): dropout/momentum/seed are stored by tabMLP.__init__ but no
    # Dropout/BatchNorm layer is ever built, so they do not affect forward.

    root = jax.random.PRNGKey(0)
    k_x, k_w = jax.random.split(root)

    # (8, 4, 8) exercises the x.view(x.size(0), -1) flatten -> (8, 32).
    x = jax.random.normal(k_x, (BATCH, 4, 8), dtype=jnp.float32)
    weights = init_tab_mlp_params(k_w, IN_CHANNELS, N_CLASSES, LAYER_SIZE, N_LAYERS)

    # Hoisted out of the forward: transpose + cast + pad + stack, done once.
    w0, wstack = prepare_params(weights, compute_dtype=jnp.bfloat16)

    out = tab_mlp_forward(x, w0, wstack, n_classes=N_CLASSES)
    out = jax.block_until_ready(out)
    assert out.shape == (BATCH, N_CLASSES), out.shape

    # Tight check vs a reference using the kernel's exact bf16/f32-accum chain.
    ref_bf16 = tab_mlp_reference(x, weights, compute_dtype=jnp.bfloat16,
                                 out_dtype=jnp.bfloat16)
    assert jnp.allclose(out, ref_bf16, atol=2e-2, rtol=2e-2), \
        "mismatch vs bf16-chain reference"

    # Loose sanity check vs the pure-f32 PyTorch-equivalent forward.
    ref_f32 = tab_mlp_reference(x, weights, compute_dtype=jnp.float32,
                                out_dtype=jnp.float32)
    assert jnp.allclose(out, ref_f32, atol=5e-2, rtol=5e-2), \
        "mismatch vs f32 reference"

    print("KERNEL_OK")
</pallas_src>

<mosaic_0001>
module attributes {stable_mosaic.version = 11 : i64} {
  func.func @tab_mlp_kernel(%arg0: i32, %arg1: memref<8x32xf32, #tpu.memory_space<vmem>>, %arg2: memref<32x128xbf16, #tpu.memory_space<vmem>>, %arg3: memref<2x128x128xbf16, #tpu.memory_space<vmem>>, %arg4: memref<8x128xbf16, #tpu.memory_space<vmem>>) attributes {dimension_semantics = [#tpu.dimension_semantics<parallel>], iteration_bounds = array<i64: 1>, scalar_prefetch = 0 : i64, scratch_operands = 0 : i64, tpu.core_type = #tpu.core_type<tc>, window_params = [{transform_indices = @transform_0, window_bounds = array<i64: 8, 32>}, {pipeline_mode = #tpu.pipeline_mode<synchronous>, transform_indices = @transform_1, window_bounds = array<i64: 32, 128>}, {pipeline_mode = #tpu.pipeline_mode<synchronous>, transform_indices = @transform_2, window_bounds = array<i64: 2, 128, 128>}, {transform_indices = @transform_3, window_bounds = array<i64: 8, 128>}]} {
    %c0 = arith.constant 0 : index
    %c0_0 = arith.constant 0 : index
    %0 = vector.load %arg1[%c0, %c0_0] : memref<8x32xf32, #tpu.memory_space<vmem>>, vector<8x32xf32>
    %1 = arith.truncf %0 : vector<8x32xf32> to vector<8x32xbf16>
    %c0_1 = arith.constant 0 : index
    %c0_2 = arith.constant 0 : index
    %2 = vector.load %arg2[%c0_1, %c0_2] : memref<32x128xbf16, #tpu.memory_space<vmem>>, vector<32x128xbf16>
    %cst = arith.constant dense<0.000000e+00> : vector<8x128xf32>
    %3 = tpu.matmul %1, %2, %cst {dimension_numbers = #tpu.dot_dimension_numbers<[1], [0], [0], [1], [0, 0, 1, 1], [], []>} : vector<8x32xbf16>, vector<32x128xbf16>, vector<8x128xf32> -> vector<8x128xf32>
    %cst_3 = arith.constant 0.000000e+00 : f32
    %4 = vector.broadcast %cst_3 : f32 to vector<8x128xf32>
    %5 = arith.maximumf %3, %4 : vector<8x128xf32>
    %6 = arith.truncf %5 : vector<8x128xf32> to vector<8x128xbf16>
    %c0_4 = arith.constant 0 : index
    %c0_5 = arith.constant 0 : index
    %c0_6 = arith.constant 0 : index
    %7 = vector.load %arg3[%c0_4, %c0_5, %c0_6] : memref<2x128x128xbf16, #tpu.memory_space<vmem>>, vector<1x128x128xbf16>
    %8 = vector.shape_cast %7 : vector<1x128x128xbf16> to vector<128x128xbf16>
    %cst_7 = arith.constant dense<0.000000e+00> : vector<8x128xf32>
    %9 = tpu.matmul %6, %8, %cst_7 {dimension_numbers = #tpu.dot_dimension_numbers<[1], [0], [0], [1], [0, 0, 1, 1], [], []>} : vector<8x128xbf16>, vector<128x128xbf16>, vector<8x128xf32> -> vector<8x128xf32>
    %cst_8 = arith.constant 0.000000e+00 : f32
    %10 = vector.broadcast %cst_8 : f32 to vector<8x128xf32>
    %11 = arith.maximumf %9, %10 : vector<8x128xf32>
    %12 = arith.truncf %11 : vector<8x128xf32> to vector<8x128xbf16>
    %c1 = arith.constant 1 : index
    %c0_9 = arith.constant 0 : index
    %c0_10 = arith.constant 0 : index
    %13 = vector.load %arg3[%c1, %c0_9, %c0_10] : memref<2x128x128xbf16, #tpu.memory_space<vmem>>, vector<1x128x128xbf16>
    %14 = vector.shape_cast %13 : vector<1x128x128xbf16> to vector<128x128xbf16>
    %cst_11 = arith.constant dense<0.000000e+00> : vector<8x128xf32>
    %15 = tpu.matmul %12, %14, %cst_11 {dimension_numbers = #tpu.dot_dimension_numbers<[1], [0], [0], [1], [0, 0, 1, 1], [], []>} : vector<8x128xbf16>, vector<128x128xbf16>, vector<8x128xf32> -> vector<8x128xf32>
    %16 = arith.truncf %15 : vector<8x128xf32> to vector<8x128xbf16>
    %c0_12 = arith.constant 0 : index
    %c0_13 = arith.constant 0 : index
    %17 = vector.load %arg4[%c0_12, %c0_13] : memref<8x128xbf16, #tpu.memory_space<vmem>>, vector<8x128xbf16>
    tpu.vector_store %arg4[%c0_12, %c0_13], %16 {strides = array<i32>} : memref<8x128xbf16, #tpu.memory_space<vmem>>, vector<8x128xbf16>,
    return
  }
  func.func @transform_0(%arg0: i32) -> (i32, i32) {
    %c0_i32 = arith.constant 0 : i32
    %c0_i32_0 = arith.constant 0 : i32
    return %arg0, %c0_i32 : i32, i32
  }
  func.func @transform_1(%arg0: i32) -> (i32, i32) {
    %c0_i32 = arith.constant 0 : i32
    %c0_i32_0 = arith.constant 0 : i32
    %c0_i32_1 = arith.constant 0 : i32
    return %c0_i32, %c0_i32_0 : i32, i32
  }
  func.func @transform_2(%arg0: i32) -> (i32, i32, i32) {
    %c0_i32 = arith.constant 0 : i32
    %c0_i32_0 = arith.constant 0 : i32
    %c0_i32_1 = arith.constant 0 : i32
    %c0_i32_2 = arith.constant 0 : i32
    return %c0_i32, %c0_i32_0, %c0_i32_1 : i32, i32, i32
  }
  func.func @transform_3(%arg0: i32) -> (i32, i32) {
    %c0_i32 = arith.constant 0 : i32
    %c0_i32_0 = arith.constant 0 : i32
    return %arg0, %c0_i32 : i32, i32
  }
}

</mosaic_0001>

<bundles_post_ra>
// kernel: tab_mlp_forward.1
= control target key start
LH: loop header
LB: loop body
LE: loop exit
PB: predicated region body
PF: predicated region fallthrough
CT: control target
= control target key end

     0   :  { %8 = vsyncpa [#allocation3], 0  ;;  %s444_s12 = smov [#allocation2]   ;;  %s487_s0 = inlined_call_operand.vmem [shape: f32[8,32], index: 0, kind: input, shape index: {}]   ;;  %s488_s1 = inlined_call_operand.vmem [shape: bf16[32,128], index: 1, kind: input, shape index: {}]   ;;  %s489_s2 = inlined_call_operand.hbm [shape: bf16[2,128,128], index: 2, kind: input, shape index: {}]   ;;  %s490_s3 = inlined_call_operand.vmem [shape: bf16[8,128], index: 3, kind: output, shape index: {}]  }
   0x1   :  { %s18_s13 = sshll.u32 %s444_s12, 4  ;;  %s19_s13 = int_to_ptr.vmem [resolvable:$true] %s18_s13 }
   0x2   :  { %s430_s14 = scalar_lea.vmem %s19_s13, 2048  ;;  %p435_p1 = scmp.lt.s32.totalorder %s19_s13, %s19_s13 }
   0x3   :  { %p431_p0 = scmp.ne.s32.totalorder %s19_s13, %s430_s14  ;;  %p436_p2 = scmp.lt.s32.totalorder %s430_s14, %s430_s14 }
   0x5   :  { %p437_p3 = por %p436_p2, %p435_p1 }
   0x7   :  { %p438_p4 = pnand %p437_p3, %p431_p0 }
   0x9   :  { %441 = shalt.err (!%p438_p4)
}
   0xa   :  { %s445_s15 = smov 64   ;;  %s446_s16 = smov 4  }
   0xb   :  { %24 = dma.hbm_to_vmem [thread:$0]  %s489_s2, 2048, %s19_s13, [#allocation3], %s445_s15, %s445_s15, %s446_s16  }
   0xc   :  { %442 = dma.done.wait [#allocation3], 2048  }
   0xd   :  { %443 = vsyncadd [#allocation3], 4294965248  ;;  %v447_v0 = vmov 0.0   ;;  %vm448_vm0 = vmmov 0   ;;  %v404_v1 = vld [vmem:[%s488_s1 + $0x8] sm:$0xff]   ;;  %v405_v2 = vld [vmem:[%s488_s1] sm:$0xff]  }
   0xe   :  { %351 = vmatprep.subr.bf16.mxu0 %v447_v0  ;;  %355 = vmatprep.mubr.msk.bf16.mxu0 %vm448_vm0, %v447_v0  ;;  %v29_v3 = vld [vmem:[%s487_s0] sm:$0xff]  ;;  %v406_v4 = vld [vmem:[#allocation2 + $0x38] sm:$0xff]   ;;  %v407_v6 = vld [vmem:[#allocation2 + $0x30] sm:$0xff]   ;;  %vm47_vm1 = vcmask 261120  }
   0xf   :  { %359 = vmatprep.subr.bf16.mxu1 %v447_v0  ;;  %375 = vmatprep.mubr.msk.bf16.mxu1 %vm448_vm0, %v447_v0  ;;  %v30_v5 = vpack.c.bf16 %v29_v3, %v29_v3  ;;  %v408_v7 = vld [vmem:[#allocation2 + $0x28] sm:$0xff]   ;;  %v409_v8 = vld [vmem:[#allocation2 + $0x20] sm:$0xff]   ;;  %v410_v9 = vld [vmem:[#allocation2 + $0x18] sm:$0xff]  }
  0x10   :  { %352 = vmatpush3.bf16.msra.mxu0 %v404_v1  ;;  %360 = vmatpush3.bf16.msra.mxu1 %v406_v4  ;;  %v411_v10 = vld [vmem:[#allocation2 + $0x10] sm:$0xff]   ;;  %v412_v11 = vld [vmem:[#allocation2 + $0x8] sm:$0xff]   ;;  %v413_v12 = vld [vmem:[#allocation2] sm:$0xff]  }
  0x11   :  { %353 = vmatprep.subr.bf16.mxu0 %v447_v0  ;;  %361 = vmatprep.subr.bf16.mxu1 %v447_v0  ;;  %v414_v13 = vld [vmem:[#allocation2 + $0x78] sm:$0xff]   ;;  %v415_v14 = vld [vmem:[#allocation2 + $0x70] sm:$0xff]   ;;  %v416_v15 = vld [vmem:[#allocation2 + $0x68] sm:$0xff]  }
  0x12   :  { %v417_v16 = vld [vmem:[#allocation2 + $0x60] sm:$0xff]   ;;  %v418_v17 = vld [vmem:[#allocation2 + $0x58] sm:$0xff]   ;;  %v419_v18 = vld [vmem:[#allocation2 + $0x50] sm:$0xff]  }
  0x13   :  { %v420_v19 = vld [vmem:[#allocation2 + $0x48] sm:$0xff]   ;;  %v421_v26 = vld [vmem:[#allocation2 + $0x40] sm:$0xff]  }
  0x14   :  { %354 = vmatpush3.bf16.msra.mxu0 %v405_v2  ;;  %362 = vmatpush3.bf16.msra.mxu1 %v407_v6 }
  0x15   :  { %379 = vmatprep.subr.bf16.mxu0 %v447_v0  ;;  %363 = vmatprep.subr.bf16.mxu1 %v447_v0 }
  0x17   :  { %356 = vmatmul.mubr.msk.bf16.vlgmr.msra.gmra.mxu0 %vm47_vm1, %v30_v5 }
  0x18   :  { %395 = vmatprep.mubr.msk.bf16.mxu0 %vm448_vm0, %v447_v0  ;;  %364 = vmatpush3.bf16.msra.mxu1 %v408_v7 }
  0x19   :  { %365 = vmatprep.subr.bf16.mxu1 %v447_v0  ;;  %380 = vmatpush3.bf16.msra.mxu0 %v414_v13 }
  0x1a   :  { %381 = vmatprep.subr.bf16.mxu0 %v447_v0 }
  0x1c   :  { %366 = vmatpush3.bf16.msra.mxu1 %v409_v8 }
  0x1d   :  { %367 = vmatprep.subr.bf16.mxu1 %v447_v0  ;;  %382 = vmatpush3.bf16.msra.mxu0 %v415_v14 }
  0x1e   :  { %383 = vmatprep.subr.bf16.mxu0 %v447_v0 }
  0x20   :  { %368 = vmatpush3.bf16.msra.mxu1 %v410_v9 }
  0x21   :  { %369 = vmatprep.subr.bf16.mxu1 %v447_v0  ;;  %384 = vmatpush3.bf16.msra.mxu0 %v416_v15 }
  0x22   :  { %385 = vmatprep.subr.bf16.mxu0 %v447_v0 }
  0x24   :  { %370 = vmatpush3.bf16.msra.mxu1 %v411_v10 }
  0x25   :  { %371 = vmatprep.subr.bf16.mxu1 %v447_v0  ;;  %386 = vmatpush3.bf16.msra.mxu0 %v417_v16 }
  0x26   :  { %387 = vmatprep.subr.bf16.mxu0 %v447_v0 }
  0x28   :  { %372 = vmatpush3.bf16.msra.mxu1 %v412_v11 }
  0x29   :  { %373 = vmatprep.subr.bf16.mxu1 %v447_v0  ;;  %388 = vmatpush3.bf16.msra.mxu0 %v418_v17 }
  0x2a   :  { %389 = vmatprep.subr.bf16.mxu0 %v447_v0 }
  0x2c   :  { %374 = vmatpush3.bf16.msra.mxu1 %v413_v12 }
  0x2d   :  { %390 = vmatpush3.bf16.msra.mxu0 %v419_v18 }
  0x2e   :  { %391 = vmatprep.subr.bf16.mxu0 %v447_v0 }
  0x31   :  { %392 = vmatpush3.bf16.msra.mxu0 %v420_v19 }
  0x32   :  { %393 = vmatprep.subr.bf16.mxu0 %v447_v0 }
  0x35   :  { %394 = vmatpush3.bf16.msra.mxu0 %v421_v26 }
  0xd7   :  { %v85_v20 = vpop.f32.mrf.mxu0 }
  0xd8   :  { %v91_v21 = vmax.f32 %v85_v20, 0.0 }
  0xd9   :  { %v357_v22 = vpop.f32.mrf.mxu0 }
  0xda   :  { %v92_v23 = vpack.c.bf16 %v91_v21, %v91_v21 }
  0xdb   :  { %v88_v24 = vpop.f32.mrf.mxu0 }
  0xdc   :  { %376 = vmatmul.mubr.bf16.vlgmr.msra.gmra.mxu1 %v92_v23 }
  0xdd   :  { %v358_v25 = vpop.f32.mrf.mxu0 }
 0x19c   :  { %v191_v27 = vpop.f32.mrf.mxu1 }
 0x19d   :  { %v197_v28 = vmax.f32 %v191_v27, 0.0 }
 0x19e   :  { %v377_v29 = vpop.f32.mrf.mxu1 }
 0x19f   :  { %v198_v30 = vpack.c.bf16 %v197_v28, %v197_v28 }
 0x1a0   :  { %v194_v31 = vpop.f32.mrf.mxu1 }
 0x1a1   :  { %396 = vmatmul.mubr.bf16.vlgmr.msra.gmra.mxu0 %v198_v30 }
 0x1a2   :  { %v378_v32 = vpop.f32.mrf.mxu1 }
 0x261   :  { %v298_v33 = vpop.f32.mrf.mxu0 }
 0x262   :  { %v304_v34 = vpack.c.bf16 %v298_v33, %v298_v33 }
 0x263   :  { %v397_v35 = vpop.f32.mrf.mxu0 }
 0x264   :  { %305 = vst [vmem:[%s490_s3] sm:$0xf] %v304_v34 }
 0x265   :  { %v301_v36 = vpop.f32.mrf.mxu0 }
 0x267   :  { %v398_v37 = vpop.f32.mrf.mxu0 }
 0x268   :  { %310 = vsyncpa [#allocation3], 1 }

</bundles_post_ra>
